<compile_context>
chip_gen: v7x
topology: tpu7x:2x2x1
jax: 0.10.0
libtpu: 0.0.40
codegen_flags: <defaults>
</compile_context>

<pallas_src>
import numpy as np

import jax
import jax.numpy as jnp
from jax import lax
from jax.experimental import pallas as pl
from jax.experimental.pallas import tpu as pltpu


# ----------------------------------------------------------------------------
# Fused Pallas kernel: conv stack (+ folded BN, ReLU) + linear head
# ----------------------------------------------------------------------------
def _make_fused_kernel(n_convs):
    """Ref layout:
         refs[0]                 : x    (1, H0, W0*Cin)    per-image block
         refs[1 + 3*i + 0]       : Sel  (k, Ho, Hi)        row-selection (0/1)
         refs[1 + 3*i + 1]       : Band (k, Wi*Ci, Wo*Co)  banded conv weight
         refs[1 + 3*i + 2]       : bias (1, Wo*Co)         lane-tiled bias
         refs[1 + 3*n_convs + 0] : Wlin (nc, Ho, Wo*Co)    permuted linear w
         refs[1 + 3*n_convs + 1] : blin (1, 1, nc)
         refs[-1]                : out  (1, 1, nc)
    """
    def kernel(*refs):
        x_ref = refs[0]
        o_ref = refs[-1]

        a = x_ref[0]                                     # (H0, W0*Cin)
        idx = 1
        for _ in range(n_convs):
            sel_ref, band_ref, bias_ref = refs[idx], refs[idx + 1], refs[idx + 2]
            idx += 3
            k = sel_ref.shape[0]
            h_out = sel_ref.shape[1]
            lanes_out = band_ref.shape[2]
            acc = jnp.zeros((h_out, lanes_out), jnp.float32)
            for kh in range(k):
                # exact strided row selection, then the banded GEMM that
                # contracts (kw, cin) and emits lane index wo*Cout + co.
                rows = jnp.dot(sel_ref[kh], a,
                               preferred_element_type=jnp.float32)
                acc = acc + jnp.dot(rows, band_ref[kh],
                                    preferred_element_type=jnp.float32)
            a = jnp.maximum(acc + bias_ref[...], 0.0)    # conv bias + ReLU
            # BatchNorm is pre-folded into Band/bias; Dropout2d is identity
            # in eval mode.

        wl_ref, bl_ref = refs[idx], refs[idx + 1]
        nc = wl_ref.shape[0]
        col = lax.broadcasted_iota(jnp.int32, (1, nc), 1)
        out = jnp.zeros((1, nc), jnp.float32)
        for o in range(nc):
            prod = a * wl_ref[o]                         # (Ho, Wo*Co), exact f32
            s = jnp.sum(prod, axis=1, keepdims=True)     # (Ho, 1)
            s = jnp.sum(s, axis=0, keepdims=True)        # (1, 1)
            out = out + jnp.where(col == o, s, 0.0)
        o_ref[0] = out + bl_ref[0]
    return kernel


def _const_index_map(ndim):
    return lambda b: (0,) * ndim


# ----------------------------------------------------------------------------
# Host-side operand preparation (one-time; layout plumbing, no per-step work)
# ----------------------------------------------------------------------------
def _fold_bn_into_conv(w_hwio, b, gamma, beta, rmean, rvar, eps):
    """Fold eval-mode BatchNorm applied to the conv *input* into the conv."""
    scale = gamma / jnp.sqrt(rvar + eps)                  # (Cin,)
    shift = beta - rmean * scale                          # (Cin,)
    w_f = w_hwio * scale[None, None, :, None]
    b_f = b + jnp.sum(w_hwio * shift[None, None, :, None], axis=(0, 1, 2))
    return w_f, b_f


def _build_conv_operands(w_hwio, b, h_in, w_in, stride):
    """Banded weight / row-selection / lane-tiled bias for one conv layer.

    Activation layout is a 2-D slab (H, W*C) with lane index = w*C + c."""
    k, _, cin, cout = w_hwio.shape
    h_out = (h_in - k) // stride + 1
    w_out = (w_in - k) // stride + 1
    w_np = np.asarray(jax.device_get(w_hwio), dtype=np.float32)

    band = np.zeros((k, w_in * cin, w_out * cout), np.float32)
    for kh in range(k):
        for kw in range(k):
            for wo in range(w_out):
                wi = wo * stride + kw
                band[kh, wi * cin:(wi + 1) * cin,
                     wo * cout:(wo + 1) * cout] = w_np[kh, kw]

    sel = np.zeros((k, h_out, h_in), np.float32)
    for kh in range(k):
        sel[kh, np.arange(h_out), np.arange(h_out) * stride + kh] = 1.0

    b_np = np.asarray(jax.device_get(b), dtype=np.float32)
    bias = np.tile(b_np, w_out).reshape(1, w_out * cout)

    return (jnp.asarray(sel), jnp.asarray(band), jnp.asarray(bias),
            h_out, w_out)


def prepare_cnn_operands(params, kernels, strides, img_size, eps=1e-5):
    n_convs = len(kernels)
    convs = []
    h, w = img_size, img_size
    for i in range(n_convs):
        w_hwio, b = params["convs"][i]
        if i > 0:   # BatchNorm precedes every conv except the first
            gamma, beta, rmean, rvar = params["bns"][i - 1]
            w_hwio, b = _fold_bn_into_conv(w_hwio, b, gamma, beta,
                                           rmean, rvar, eps)
        sel, band, bias, h, w = _build_conv_operands(w_hwio, b, h, w, strides[i])
        convs.append((sel, band, bias))

    c_last = params["convs"][-1][0].shape[-1]
    lw, lb = params["linear"]
    nc = lw.shape[1]
    # lw rows are in PyTorch NCHW-flat order (c*H*W + h*W + w); permute once to
    # the kernel's (h, w*C + c) activation layout -> shape (nc, H, W*C).
    wl = np.asarray(jax.device_get(lw), dtype=np.float32)
    wl = wl.reshape(c_last, h, w, nc).transpose(3, 1, 2, 0).reshape(nc, h, w * c_last)
    bl = np.asarray(jax.device_get(lb), dtype=np.float32).reshape(1, 1, nc)
    return {"convs": convs,
            "linear": (jnp.asarray(wl), jnp.asarray(bl)),
            "n_convs": n_convs}


# ----------------------------------------------------------------------------
# Forward pass: one fused pallas_call, grid over the batch
# ----------------------------------------------------------------------------
def cnn_forward(prep, x_nchw):
    x_nhwc = jnp.transpose(x_nchw, (0, 2, 3, 1)).astype(jnp.float32)
    n, h0, w0, c0 = x_nhwc.shape
    x2d = x_nhwc.reshape(n, h0, w0 * c0)

    operands = [x2d]
    in_specs = [pl.BlockSpec((1, h0, w0 * c0), lambda b: (b, 0, 0))]
    for sel, band, bias in prep["convs"]:
        for arr in (sel, band, bias):
            operands.append(arr)
            in_specs.append(pl.BlockSpec(arr.shape, _const_index_map(arr.ndim)))
    wl, bl = prep["linear"]
    nc = wl.shape[0]
    for arr in (wl, bl):
        operands.append(arr)
        in_specs.append(pl.BlockSpec(arr.shape, _const_index_map(arr.ndim)))

    out = pl.pallas_call(
        _make_fused_kernel(prep["n_convs"]),
        out_shape=jax.ShapeDtypeStruct((n, 1, nc), jnp.float32),
        grid=(n,),
        in_specs=in_specs,
        out_specs=pl.BlockSpec((1, 1, nc), lambda b: (b, 0, 0)),
        compiler_params=pltpu.CompilerParams(
            dimension_semantics=("parallel",),      # split batch across TCs (v7x)
            vmem_limit_bytes=32 * 1024 * 1024),     # explicit, safe on v5e/v6e/v7x
    )(*operands)
    return out.reshape(n, nc)


# ----------------------------------------------------------------------------
# Parameter init (strides passed explicitly -- fixes the old global-var bug)
# ----------------------------------------------------------------------------
def init_cnn_params(key, channels, kernels, strides, img_size,
                    in_channels=3, num_classes=2):
    assert len(channels) == len(kernels) == len(strides), \
        "Channels, kernels and strides must have same length."
    final_resolution = float(img_size)
    for k, s in zip(kernels, strides):
        final_resolution = (final_resolution - k + 1) / s
        assert final_resolution.is_integer(), "Resolution is not a whole number."
        final_resolution = float(int(final_resolution))
    final_resolution = int(final_resolution)

    params = {"convs": [], "bns": []}
    cs = [in_channels] + list(channels)
    for i, k in enumerate(kernels):
        key, kw_key, kb_key = jax.random.split(key, 3)
        w = jax.random.normal(kw_key, (k, k, cs[i], cs[i + 1]), jnp.float32) * 0.05
        b = jax.random.normal(kb_key, (cs[i + 1],), jnp.float32) * 0.01
        params["convs"].append((w, b))
    for c in channels[:-1]:
        params["bns"].append((jnp.ones((c,), jnp.float32),
                              jnp.zeros((c,), jnp.float32),
                              jnp.zeros((c,), jnp.float32),
                              jnp.ones((c,), jnp.float32)))
    linear_in = channels[-1] * final_resolution ** 2
    key, lw_key = jax.random.split(key)
    lw = jax.random.normal(lw_key, (linear_in, num_classes), jnp.float32) * 0.05
    lb = jnp.zeros((num_classes,), jnp.float32)
    params["linear"] = (lw, lb)
    return params


# Pure-JAX reference (for correctness check only)
def reference_forward(params, x_nchw, kernels, strides, eps=1e-5):
    x = jnp.transpose(x_nchw, (0, 2, 3, 1))

    def conv(x, w, b, s):
        y = lax.conv_general_dilated(
            x, w, (s, s), "VALID",
            dimension_numbers=("NHWC", "HWIO", "NHWC"),
            precision=lax.Precision.HIGHEST)
        return jnp.maximum(y + b, 0.0)

    w0, b0 = params["convs"][0]
    x = conv(x, w0, b0, strides[0])
    for i in range(1, len(kernels)):
        gamma, beta, rmean, rvar = params["bns"][i - 1]
        x = (x - rmean) / jnp.sqrt(rvar + eps) * gamma + beta
        wi, bi = params["convs"][i]
        x = conv(x, wi, bi, strides[i])
    n, h, w, c = x.shape
    x = jnp.transpose(x, (0, 3, 1, 2)).reshape(n, c * h * w)   # NCHW flatten
    lw, lb = params["linear"]
    return jnp.dot(x, lw, precision=lax.Precision.HIGHEST) + lb


if __name__ == "__main__":
    # small config consistent with the module's constructor
    channels = [4, 8]
    kernels = [3, 3]
    strides = [1, 1]
    dropout_p = 0.1        # Dropout2d is identity in eval mode
    img_size = 16
    batch = 2

    key = jax.random.PRNGKey(0)
    key, xk = jax.random.split(key)
    x = jax.random.normal(xk, (batch, 3, img_size, img_size), jnp.float32)  # NCHW

    params = init_cnn_params(key, channels, kernels, strides, img_size)
    prep = prepare_cnn_operands(params, kernels, strides, img_size)

    out = jax.block_until_ready(cnn_forward(prep, x))
    ref = jax.block_until_ready(reference_forward(params, x, kernels, strides))

    assert out.shape == (batch, 2), out.shape
    assert jnp.allclose(out, ref, atol=2e-3, rtol=2e-3), (out, ref)

    print("KERNEL_OK")
</pallas_src>

<mosaic_0001>
module attributes {stable_mosaic.version = 11 : i64} {
  func.func @kernel(%arg0: i32, %arg1: memref<1x16x48xf32, #tpu.memory_space<vmem>>, %arg2: memref<3x14x16xf32, #tpu.memory_space<vmem>>, %arg3: memref<3x48x56xf32, #tpu.memory_space<vmem>>, %arg4: memref<1x56xf32, #tpu.memory_space<vmem>>, %arg5: memref<3x12x14xf32, #tpu.memory_space<vmem>>, %arg6: memref<3x56x96xf32, #tpu.memory_space<vmem>>, %arg7: memref<1x96xf32, #tpu.memory_space<vmem>>, %arg8: memref<2x12x96xf32, #tpu.memory_space<vmem>>, %arg9: memref<1x1x2xf32, #tpu.memory_space<vmem>>, %arg10: memref<1x1x2xf32, #tpu.memory_space<vmem>>) attributes {dimension_semantics = [#tpu.dimension_semantics<parallel>], iteration_bounds = array<i64: 2>, scalar_prefetch = 0 : i64, scratch_operands = 0 : i64, tpu.core_type = #tpu.core_type<tc>, window_params = [{transform_indices = @transform_0, window_bounds = array<i64: 1, 16, 48>}, {pipeline_mode = #tpu.pipeline_mode<synchronous>, transform_indices = @transform_1, window_bounds = array<i64: 3, 14, 16>}, {pipeline_mode = #tpu.pipeline_mode<synchronous>, transform_indices = @transform_2, window_bounds = array<i64: 3, 48, 56>}, {pipeline_mode = #tpu.pipeline_mode<synchronous>, transform_indices = @transform_3, window_bounds = array<i64: 1, 56>}, {pipeline_mode = #tpu.pipeline_mode<synchronous>, transform_indices = @transform_4, window_bounds = array<i64: 3, 12, 14>}, {pipeline_mode = #tpu.pipeline_mode<synchronous>, transform_indices = @transform_5, window_bounds = array<i64: 3, 56, 96>}, {pipeline_mode = #tpu.pipeline_mode<synchronous>, transform_indices = @transform_6, window_bounds = array<i64: 1, 96>}, {pipeline_mode = #tpu.pipeline_mode<synchronous>, transform_indices = @transform_7, window_bounds = array<i64: 2, 12, 96>}, {pipeline_mode = #tpu.pipeline_mode<synchronous>, transform_indices = @transform_8, window_bounds = array<i64: 1, 1, 2>}, {transform_indices = @transform_9, window_bounds = array<i64: 1, 1, 2>}]} {
    %c0 = arith.constant 0 : index
    %c0_0 = arith.constant 0 : index
    %c0_1 = arith.constant 0 : index
    %0 = vector.load %arg1[%c0, %c0_0, %c0_1] : memref<1x16x48xf32, #tpu.memory_space<vmem>>, vector<1x16x48xf32>
    %1 = vector.shape_cast %0 : vector<1x16x48xf32> to vector<16x48xf32>
    %cst = arith.constant 0.000000e+00 : f32
    %2 = vector.broadcast %cst : f32 to vector<14x56xf32>
    %c0_2 = arith.constant 0 : index
    %c0_3 = arith.constant 0 : index
    %c0_4 = arith.constant 0 : index
    %3 = vector.load %arg2[%c0_2, %c0_3, %c0_4] : memref<3x14x16xf32, #tpu.memory_space<vmem>>, vector<1x14x16xf32>
    %4 = vector.shape_cast %3 : vector<1x14x16xf32> to vector<14x16xf32>
    %cst_5 = arith.constant dense<0.000000e+00> : vector<14x48xf32>
    %5 = tpu.matmul %4, %1, %cst_5 {dimension_numbers = #tpu.dot_dimension_numbers<[1], [0], [0], [1], [0, 0, 1, 1], [], []>} : vector<14x16xf32>, vector<16x48xf32>, vector<14x48xf32> -> vector<14x48xf32>
    %c0_6 = arith.constant 0 : index
    %c0_7 = arith.constant 0 : index
    %c0_8 = arith.constant 0 : index
    %6 = vector.load %arg3[%c0_6, %c0_7, %c0_8] : memref<3x48x56xf32, #tpu.memory_space<vmem>>, vector<1x48x56xf32>
    %7 = vector.shape_cast %6 : vector<1x48x56xf32> to vector<48x56xf32>
    %cst_9 = arith.constant dense<0.000000e+00> : vector<14x56xf32>
    %8 = tpu.matmul %5, %7, %cst_9 {dimension_numbers = #tpu.dot_dimension_numbers<[1], [0], [0], [1], [0, 0, 1, 1], [], []>} : vector<14x48xf32>, vector<48x56xf32>, vector<14x56xf32> -> vector<14x56xf32>
    %9 = arith.addf %2, %8 : vector<14x56xf32>
    %c1 = arith.constant 1 : index
    %c0_10 = arith.constant 0 : index
    %c0_11 = arith.constant 0 : index
    %10 = vector.load %arg2[%c1, %c0_10, %c0_11] : memref<3x14x16xf32, #tpu.memory_space<vmem>>, vector<1x14x16xf32>
    %11 = vector.shape_cast %10 : vector<1x14x16xf32> to vector<14x16xf32>
    %cst_12 = arith.constant dense<0.000000e+00> : vector<14x48xf32>
    %12 = tpu.matmul %11, %1, %cst_12 {dimension_numbers = #tpu.dot_dimension_numbers<[1], [0], [0], [1], [0, 0, 1, 1], [], []>} : vector<14x16xf32>, vector<16x48xf32>, vector<14x48xf32> -> vector<14x48xf32>
    %c1_13 = arith.constant 1 : index
    %c0_14 = arith.constant 0 : index
    %c0_15 = arith.constant 0 : index
    %13 = vector.load %arg3[%c1_13, %c0_14, %c0_15] : memref<3x48x56xf32, #tpu.memory_space<vmem>>, vector<1x48x56xf32>
    %14 = vector.shape_cast %13 : vector<1x48x56xf32> to vector<48x56xf32>
    %cst_16 = arith.constant dense<0.000000e+00> : vector<14x56xf32>
    %15 = tpu.matmul %12, %14, %cst_16 {dimension_numbers = #tpu.dot_dimension_numbers<[1], [0], [0], [1], [0, 0, 1, 1], [], []>} : vector<14x48xf32>, vector<48x56xf32>, vector<14x56xf32> -> vector<14x56xf32>
    %16 = arith.addf %9, %15 : vector<14x56xf32>
    %c2 = arith.constant 2 : index
    %c0_17 = arith.constant 0 : index
    %c0_18 = arith.constant 0 : index
    %17 = vector.load %arg2[%c2, %c0_17, %c0_18] : memref<3x14x16xf32, #tpu.memory_space<vmem>>, vector<1x14x16xf32>
    %18 = vector.shape_cast %17 : vector<1x14x16xf32> to vector<14x16xf32>
    %cst_19 = arith.constant dense<0.000000e+00> : vector<14x48xf32>
    %19 = tpu.matmul %18, %1, %cst_19 {dimension_numbers = #tpu.dot_dimension_numbers<[1], [0], [0], [1], [0, 0, 1, 1], [], []>} : vector<14x16xf32>, vector<16x48xf32>, vector<14x48xf32> -> vector<14x48xf32>
    %c2_20 = arith.constant 2 : index
    %c0_21 = arith.constant 0 : index
    %c0_22 = arith.constant 0 : index
    %20 = vector.load %arg3[%c2_20, %c0_21, %c0_22] : memref<3x48x56xf32, #tpu.memory_space<vmem>>, vector<1x48x56xf32>
    %21 = vector.shape_cast %20 : vector<1x48x56xf32> to vector<48x56xf32>
    %cst_23 = arith.constant dense<0.000000e+00> : vector<14x56xf32>
    %22 = tpu.matmul %19, %21, %cst_23 {dimension_numbers = #tpu.dot_dimension_numbers<[1], [0], [0], [1], [0, 0, 1, 1], [], []>} : vector<14x48xf32>, vector<48x56xf32>, vector<14x56xf32> -> vector<14x56xf32>
    %23 = arith.addf %16, %22 : vector<14x56xf32>
    %c0_24 = arith.constant 0 : index
    %c0_25 = arith.constant 0 : index
    %24 = vector.load %arg4[%c0_24, %c0_25] : memref<1x56xf32, #tpu.memory_space<vmem>>, vector<1x56xf32>
    %25 = vector.broadcast %24 : vector<1x56xf32> to vector<14x56xf32>
    %26 = arith.addf %23, %25 : vector<14x56xf32>
    %cst_26 = arith.constant 0.000000e+00 : f32
    %27 = vector.broadcast %cst_26 : f32 to vector<14x56xf32>
    %28 = arith.maximumf %26, %27 : vector<14x56xf32>
    %cst_27 = arith.constant 0.000000e+00 : f32
    %29 = vector.broadcast %cst_27 : f32 to vector<12x96xf32>
    %c0_28 = arith.constant 0 : index
    %c0_29 = arith.constant 0 : index
    %c0_30 = arith.constant 0 : index
    %30 = vector.load %arg5[%c0_28, %c0_29, %c0_30] : memref<3x12x14xf32, #tpu.memory_space<vmem>>, vector<1x12x14xf32>
    %31 = vector.shape_cast %30 : vector<1x12x14xf32> to vector<12x14xf32>
    %cst_31 = arith.constant dense<0.000000e+00> : vector<12x56xf32>
    %32 = tpu.matmul %31, %28, %cst_31 {dimension_numbers = #tpu.dot_dimension_numbers<[1], [0], [0], [1], [0, 0, 1, 1], [], []>} : vector<12x14xf32>, vector<14x56xf32>, vector<12x56xf32> -> vector<12x56xf32>
    %c0_32 = arith.constant 0 : index
    %c0_33 = arith.constant 0 : index
    %c0_34 = arith.constant 0 : index
    %33 = vector.load %arg6[%c0_32, %c0_33, %c0_34] : memref<3x56x96xf32, #tpu.memory_space<vmem>>, vector<1x56x96xf32>
    %34 = vector.shape_cast %33 : vector<1x56x96xf32> to vector<56x96xf32>
    %cst_35 = arith.constant dense<0.000000e+00> : vector<12x96xf32>
    %35 = tpu.matmul %32, %34, %cst_35 {dimension_numbers = #tpu.dot_dimension_numbers<[1], [0], [0], [1], [0, 0, 1, 1], [], []>} : vector<12x56xf32>, vector<56x96xf32>, vector<12x96xf32> -> vector<12x96xf32>
    %36 = arith.addf %29, %35 : vector<12x96xf32>
    %c1_36 = arith.constant 1 : index
    %c0_37 = arith.constant 0 : index
    %c0_38 = arith.constant 0 : index
    %37 = vector.load %arg5[%c1_36, %c0_37, %c0_38] : memref<3x12x14xf32, #tpu.memory_space<vmem>>, vector<1x12x14xf32>
    %38 = vector.shape_cast %37 : vector<1x12x14xf32> to vector<12x14xf32>
    %cst_39 = arith.constant dense<0.000000e+00> : vector<12x56xf32>
    %39 = tpu.matmul %38, %28, %cst_39 {dimension_numbers = #tpu.dot_dimension_numbers<[1], [0], [0], [1], [0, 0, 1, 1], [], []>} : vector<12x14xf32>, vector<14x56xf32>, vector<12x56xf32> -> vector<12x56xf32>
    %c1_40 = arith.constant 1 : index
    %c0_41 = arith.constant 0 : index
    %c0_42 = arith.constant 0 : index
    %40 = vector.load %arg6[%c1_40, %c0_41, %c0_42] : memref<3x56x96xf32, #tpu.memory_space<vmem>>, vector<1x56x96xf32>
    %41 = vector.shape_cast %40 : vector<1x56x96xf32> to vector<56x96xf32>
    %cst_43 = arith.constant dense<0.000000e+00> : vector<12x96xf32>
    %42 = tpu.matmul %39, %41, %cst_43 {dimension_numbers = #tpu.dot_dimension_numbers<[1], [0], [0], [1], [0, 0, 1, 1], [], []>} : vector<12x56xf32>, vector<56x96xf32>, vector<12x96xf32> -> vector<12x96xf32>
    %43 = arith.addf %36, %42 : vector<12x96xf32>
    %c2_44 = arith.constant 2 : index
    %c0_45 = arith.constant 0 : index
    %c0_46 = arith.constant 0 : index
    %44 = vector.load %arg5[%c2_44, %c0_45, %c0_46] : memref<3x12x14xf32, #tpu.memory_space<vmem>>, vector<1x12x14xf32>
    %45 = vector.shape_cast %44 : vector<1x12x14xf32> to vector<12x14xf32>
    %cst_47 = arith.constant dense<0.000000e+00> : vector<12x56xf32>
    %46 = tpu.matmul %45, %28, %cst_47 {dimension_numbers = #tpu.dot_dimension_numbers<[1], [0], [0], [1], [0, 0, 1, 1], [], []>} : vector<12x14xf32>, vector<14x56xf32>, vector<12x56xf32> -> vector<12x56xf32>
    %c2_48 = arith.constant 2 : index
    %c0_49 = arith.constant 0 : index
    %c0_50 = arith.constant 0 : index
    %47 = vector.load %arg6[%c2_48, %c0_49, %c0_50] : memref<3x56x96xf32, #tpu.memory_space<vmem>>, vector<1x56x96xf32>
    %48 = vector.shape_cast %47 : vector<1x56x96xf32> to vector<56x96xf32>
    %cst_51 = arith.constant dense<0.000000e+00> : vector<12x96xf32>
    %49 = tpu.matmul %46, %48, %cst_51 {dimension_numbers = #tpu.dot_dimension_numbers<[1], [0], [0], [1], [0, 0, 1, 1], [], []>} : vector<12x56xf32>, vector<56x96xf32>, vector<12x96xf32> -> vector<12x96xf32>
    %50 = arith.addf %43, %49 : vector<12x96xf32>
    %c0_52 = arith.constant 0 : index
    %c0_53 = arith.constant 0 : index
    %51 = vector.load %arg7[%c0_52, %c0_53] : memref<1x96xf32, #tpu.memory_space<vmem>>, vector<1x96xf32>
    %52 = vector.broadcast %51 : vector<1x96xf32> to vector<12x96xf32>
    %53 = arith.addf %50, %52 : vector<12x96xf32>
    %cst_54 = arith.constant 0.000000e+00 : f32
    %54 = vector.broadcast %cst_54 : f32 to vector<12x96xf32>
    %55 = arith.maximumf %53, %54 : vector<12x96xf32>
    %56 = tpu.iota {dimensions = array<i32: 1>} : vector<1x2xi32>
    %cst_55 = arith.constant 0.000000e+00 : f32
    %57 = vector.broadcast %cst_55 : f32 to vector<1x2xf32>
    %c0_56 = arith.constant 0 : index
    %c0_57 = arith.constant 0 : index
    %c0_58 = arith.constant 0 : index
    %58 = vector.load %arg8[%c0_56, %c0_57, %c0_58] : memref<2x12x96xf32, #tpu.memory_space<vmem>>, vector<1x12x96xf32>
    %59 = vector.shape_cast %58 : vector<1x12x96xf32> to vector<12x96xf32>
    %60 = arith.mulf %55, %59 : vector<12x96xf32>
    %cst_59 = arith.constant dense<0.000000e+00> : vector<12xf32>
    %61 = vector.multi_reduction <add>, %60, %cst_59 [1] : vector<12x96xf32> to vector<12xf32>
    %62 = vector.shape_cast %61 : vector<12xf32> to vector<12x1xf32>
    %cst_60 = arith.constant dense<0.000000e+00> : vector<1xf32>
    %63 = vector.multi_reduction <add>, %62, %cst_60 [0] : vector<12x1xf32> to vector<1xf32>
    %64 = vector.shape_cast %63 : vector<1xf32> to vector<1x1xf32>
    %c0_i32 = arith.constant 0 : i32
    %65 = vector.broadcast %c0_i32 : i32 to vector<1x2xi32>
    %66 = arith.cmpi eq, %56, %65 : vector<1x2xi32>
    %cst_61 = arith.constant 0.000000e+00 : f32
    %67 = vector.shape_cast %64 : vector<1x1xf32> to vector<1x1xf32>
    %68 = vector.broadcast %67 : vector<1x1xf32> to vector<1x2xf32>
    %69 = vector.broadcast %cst_61 : f32 to vector<1x2xf32>
    %70 = arith.select %66, %68, %69 : vector<1x2xi1>, vector<1x2xf32>
    %71 = arith.addf %57, %70 : vector<1x2xf32>
    %c1_62 = arith.constant 1 : index
    %c0_63 = arith.constant 0 : index
    %c0_64 = arith.constant 0 : index
    %72 = vector.load %arg8[%c1_62, %c0_63, %c0_64] : memref<2x12x96xf32, #tpu.memory_space<vmem>>, vector<1x12x96xf32>
    %73 = vector.shape_cast %72 : vector<1x12x96xf32> to vector<12x96xf32>
    %74 = arith.mulf %55, %73 : vector<12x96xf32>
    %cst_65 = arith.constant dense<0.000000e+00> : vector<12xf32>
    %75 = vector.multi_reduction <add>, %74, %cst_65 [1] : vector<12x96xf32> to vector<12xf32>
    %76 = vector.shape_cast %75 : vector<12xf32> to vector<12x1xf32>
    %cst_66 = arith.constant dense<0.000000e+00> : vector<1xf32>
    %77 = vector.multi_reduction <add>, %76, %cst_66 [0] : vector<12x1xf32> to vector<1xf32>
    %78 = vector.shape_cast %77 : vector<1xf32> to vector<1x1xf32>
    %c1_i32 = arith.constant 1 : i32
    %79 = vector.broadcast %c1_i32 : i32 to vector<1x2xi32>
    %80 = arith.cmpi eq, %56, %79 : vector<1x2xi32>
    %cst_67 = arith.constant 0.000000e+00 : f32
    %81 = vector.shape_cast %78 : vector<1x1xf32> to vector<1x1xf32>
    %82 = vector.broadcast %81 : vector<1x1xf32> to vector<1x2xf32>
    %83 = vector.broadcast %cst_67 : f32 to vector<1x2xf32>
    %84 = arith.select %80, %82, %83 : vector<1x2xi1>, vector<1x2xf32>
    %85 = arith.addf %71, %84 : vector<1x2xf32>
    %c0_68 = arith.constant 0 : index
    %c0_69 = arith.constant 0 : index
    %c0_70 = arith.constant 0 : index
    %86 = vector.load %arg9[%c0_68, %c0_69, %c0_70] : memref<1x1x2xf32, #tpu.memory_space<vmem>>, vector<1x1x2xf32>
    %87 = vector.shape_cast %86 : vector<1x1x2xf32> to vector<1x2xf32>
    %88 = arith.addf %85, %87 : vector<1x2xf32>
    %c0_71 = arith.constant 0 : index
    %c0_72 = arith.constant 0 : index
    %c0_73 = arith.constant 0 : index
    %89 = vector.load %arg10[%c0_71, %c0_72, %c0_73] : memref<1x1x2xf32, #tpu.memory_space<vmem>>, vector<1x1x2xf32>
    %90 = vector.shape_cast %89 : vector<1x1x2xf32> to vector<1x2xf32>
    %91 = vector.shape_cast %88 : vector<1x2xf32> to vector<1x1x2xf32>
    tpu.vector_store %arg10[%c0_71, %c0_72, %c0_73], %91 {strides = array<i32>} : memref<1x1x2xf32, #tpu.memory_space<vmem>>, vector<1x1x2xf32>,
    return
  }
  func.func @transform_0(%arg0: i32) -> (i32, i32, i32) {
    %c0_i32 = arith.constant 0 : i32
    %c0_i32_0 = arith.constant 0 : i32
    %c0_i32_1 = arith.constant 0 : i32
    return %arg0, %c0_i32, %c0_i32_0 : i32, i32, i32
  }
  func.func @transform_1(%arg0: i32) -> (i32, i32, i32) {
    %c0_i32 = arith.constant 0 : i32
    %c0_i32_0 = arith.constant 0 : i32
    %c0_i32_1 = arith.constant 0 : i32
    %c0_i32_2 = arith.constant 0 : i32
    return %c0_i32, %c0_i32_0, %c0_i32_1 : i32, i32, i32
  }
  func.func @transform_2(%arg0: i32) -> (i32, i32, i32) {
    %c0_i32 = arith.constant 0 : i32
    %c0_i32_0 = arith.constant 0 : i32
    %c0_i32_1 = arith.constant 0 : i32
    %c0_i32_2 = arith.constant 0 : i32
    return %c0_i32, %c0_i32_0, %c0_i32_1 : i32, i32, i32
  }
  func.func @transform_3(%arg0: i32) -> (i32, i32) {
    %c0_i32 = arith.constant 0 : i32
    %c0_i32_0 = arith.constant 0 : i32
    %c0_i32_1 = arith.constant 0 : i32
    return %c0_i32, %c0_i32_0 : i32, i32
  }
  func.func @transform_4(%arg0: i32) -> (i32, i32, i32) {
    %c0_i32 = arith.constant 0 : i32
    %c0_i32_0 = arith.constant 0 : i32
    %c0_i32_1 = arith.constant 0 : i32
    %c0_i32_2 = arith.constant 0 : i32
    return %c0_i32, %c0_i32_0, %c0_i32_1 : i32, i32, i32
  }
  func.func @transform_5(%arg0: i32) -> (i32, i32, i32) {
    %c0_i32 = arith.constant 0 : i32
    %c0_i32_0 = arith.constant 0 : i32
    %c0_i32_1 = arith.constant 0 : i32
    %c0_i32_2 = arith.constant 0 : i32
    return %c0_i32, %c0_i32_0, %c0_i32_1 : i32, i32, i32
  }
  func.func @transform_6(%arg0: i32) -> (i32, i32) {
    %c0_i32 = arith.constant 0 : i32
    %c0_i32_0 = arith.constant 0 : i32
    %c0_i32_1 = arith.constant 0 : i32
    return %c0_i32, %c0_i32_0 : i32, i32
  }
  func.func @transform_7(%arg0: i32) -> (i32, i32, i32) {
    %c0_i32 = arith.constant 0 : i32
    %c0_i32_0 = arith.constant 0 : i32
    %c0_i32_1 = arith.constant 0 : i32
    %c0_i32_2 = arith.constant 0 : i32
    return %c0_i32, %c0_i32_0, %c0_i32_1 : i32, i32, i32
  }
  func.func @transform_8(%arg0: i32) -> (i32, i32, i32) {
    %c0_i32 = arith.constant 0 : i32
    %c0_i32_0 = arith.constant 0 : i32
    %c0_i32_1 = arith.constant 0 : i32
    %c0_i32_2 = arith.constant 0 : i32
    return %c0_i32, %c0_i32_0, %c0_i32_1 : i32, i32, i32
  }
  func.func @transform_9(%arg0: i32) -> (i32, i32, i32) {
    %c0_i32 = arith.constant 0 : i32
    %c0_i32_0 = arith.constant 0 : i32
    %c0_i32_1 = arith.constant 0 : i32
    return %arg0, %c0_i32, %c0_i32_0 : i32, i32, i32
  }
}

</mosaic_0001>

<bundles_post_ra>
// kernel: tpu_custom_call.1
= control target key start
LH: loop header
LB: loop body
LE: loop exit
PB: predicated region body
PF: predicated region fallthrough
CT: control target
= control target key end

     0   :  { %s2674_s0 = inlined_call_operand.hbm [shape: f32[2,16,48], index: 0, kind: input, shape index: {}]   ;;  %s2675_s1 = inlined_call_operand.vmem [shape: f32[3,14,16], index: 1, kind: input, shape index: {}]   ;;  %s2676_s2 = inlined_call_operand.hbm [shape: f32[3,48,56], index: 2, kind: input, shape index: {}]   ;;  %s2677_s3 = inlined_call_operand.vmem [shape: f32[1,56], index: 3, kind: input, shape index: {}]   ;;  %s2678_s4 = inlined_call_operand.hbm [shape: f32[3,12,14], index: 4, kind: input, shape index: {}]   ;;  %s2679_s5 = inlined_call_operand.hbm [shape: f32[3,56,96], index: 5, kind: input, shape index: {}]   ;;  %s2680_s6 = inlined_call_operand.vmem [shape: f32[1,96], index: 6, kind: input, shape index: {}]   ;;  %s2681_s7 = inlined_call_operand.vmem [shape: f32[2,12,96], index: 7, kind: input, shape index: {}]   ;;  %s2682_s8 = inlined_call_operand.vmem [shape: f32[1,1,2], index: 8, kind: input, shape index: {}]   ;;  %s2683_s9 = inlined_call_operand.hbm [shape: f32[2,1,2], index: 9, kind: output, shape index: {}]  }
   0x1   :  { %2690 = sst [smem:[#allocation17_spill]] %s2683_s9 }
   0x2   :  { %14 = vsyncpa [#allocation3], 0 }
   0x3   :  { %16 = vsyncpa [#allocation3 + $0x1], 0 }
   0x4   :  { %17 = vsyncpa [#allocation6], 0 }
   0x5   :  { %18 = vsyncpa [#allocation9], 0 }
   0x6   :  { %19 = vsyncpa [#allocation4], 0 }
   0x7   :  { %21 = vsyncpa [#allocation4 + $0x1], 0  ;;  %s2325_s30 = smov 0   ;;  %s2327_s10 = smov 0  }
   0x8   :  { %s2329_s11 = smov 0   ;;  %s2331_s12 = smov 0  }
   0x9 LB: > { %2691 = sst [smem:[#allocation15_spill]] %s2253_s30  ;;  %s2346_s13 = sadd.s32 4294967295, %s2265_s12   ;;  %s2265_s12 = sphi %s2331_s12, %s2717_s12   ;;  %s2261_s11 = sphi %s2329_s11, %s2716_s11   ;;  %s2257_s10 = sphi %s2327_s10, %s2715_s10   ;;  %s2253_s30 = sphi %s2325_s30, %s2714_s30  }
   0xa   : > { %s1621_s14 = sadd.s32 4294967294, %s2265_s12   ;;  %p47_p0 = scmp.ne.s32.totalorder %s2257_s10, %s2253_s30 }
   0xb   : > { %p2684_p1 = scmp.eq.s32.totalorder %s2346_s13, 0  ;;  %p245_p3 = scmp.eq.s32.totalorder %s1621_s14, 1 }
   0xc   : > { %p1622_p5 = scmp.ge.s32.totalorder %s2265_s12, 1  ;;  %p252_p7 = scmp.lt.s32.totalorder %s2265_s12, 3 }
   0xd   : > { %p2355_p4 = por %p2684_p1, %p47_p0  ;;  %p2360_p6 = por %p245_p3, %p47_p0 }
   0xe   : > { %p2365_p8 = pnand %p1622_p5, %p252_p7  ;;  %s2267_s18 = smov [#allocation5]  }
   0xf   : > { %s2692_s15 = scalar_select %p2355_p4, 1, 0 }
  0x10   : > { %s2693_s16 = scalar_select %p2360_p6, 1, 0 }
  0x11   : > { %s2695_s17 = scalar_select %p2365_p8, 1, 0 }
  0x12   : > { %2694 = sst [smem:[#allocation16_spill]] %s2693_s16  ;;  %s267_s19 = sshll.u32 %s2267_s18, 4  ;;  %s2369_s19 = int_to_ptr.vmem [resolvable:$true] %s267_s19 }
  0x13   : > { %p2013_p9 = pneg %p2365_p8  ;;  %s2268_s21 = smov [#allocation7]  }
  0x14   : > { %s283_s22 = sshll.u32 %s2268_s21, 4  ;;  %s2269_s23 = smov [#allocation8]   ;;  %s2380_s22 = int_to_ptr.vmem [resolvable:$true] %s283_s22 }
  0x15   : > { %p2376_p11 = pnand %p2013_p9, %p2684_p1  ;;  %s2382_s24 = sshll.u32 %s2269_s23, 4  ;;  %s297_s24 = int_to_ptr.vmem [resolvable:$true] %s2382_s24 }
  0x16   : > { %s2077_s27 = scalar_lea.hbm %s2676_s2, 2304 }
  0x17   : > { %p2078_p12 = scmp.ne.s32.totalorder %s2676_s2, %s2077_s27  ;;  %p2392_p13 = pneg %p2376_p11 }
  0x18   : > { %p2084_p5 = scmp.lt.u32.totalorder %s2077_s27, %s2676_s2 }
  0x19   : > { %p2080_p0 = pnand %p2392_p13, %p2078_p12 }
  0x1b   : > { %p2081_p3 = pneg %p2080_p0 }
  0x1d   : > { %p2086_p7 = pnand %p2084_p5, %p2081_p3 }
  0x1f   : > { %2089 = shalt.err (!%p2086_p7)
}
  0x20   : > { %s2090_s23 = scalar_lea.vmem %s2369_s19, 2304  ;;  %p2098_p2 = scmp.lt.s32.totalorder %s2369_s19, %s2369_s19 }
  0x21   : > { %p2091_p9 = scmp.ne.s32.totalorder %s2369_s19, %s2090_s23  ;;  %p2099_p6 = scmp.lt.s32.totalorder %s2090_s23, %s2090_s23 }
  0x23   : > { %p2093_p10 = pnand %p2091_p9, %p2392_p13  ;;  %p2100_p12 = por %p2099_p6, %p2098_p2 }
  0x25   : > { %p2094_p1 = pneg %p2093_p10 }
  0x27   : > { %p2101_p0 = pnand %p2100_p12, %p2094_p1 }
  0x29   : > { %2104 = shalt.err (!%p2101_p0)
}
  0x2a   : > { %s2270_s25 = smov 128   ;;  %s2271_s26 = smov 8  }
  0x2b   : > { %2016 = dma.hbm_to_vmem [thread:$0]  (!%p2376_p11), %s2676_s2, 2304, %s2369_s19, [#allocation6], %s2270_s25, %s2270_s25, %s2271_s26  }
  0x2c   : > { %s2105_s21 = scalar_lea.hbm %s2678_s4, 768 }
  0x2d   : > { %p2106_p1 = scmp.ne.s32.totalorder %s2678_s4, %s2105_s21  ;;  %p2112_p10 = scmp.lt.u32.totalorder %s2105_s21, %s2678_s4 }
  0x2f   : > { %p2108_p2 = pnand %p2106_p1, %p2392_p13 }
  0x31   : > { %p2109_p6 = pneg %p2108_p2 }
  0x33   : > { %p2114_p3 = pnand %p2112_p10, %p2109_p6 }
  0x35   : > { %2117 = shalt.err (!%p2114_p3)
}
  0x36   : > { %s2118_s19 = scalar_lea.vmem %s2380_s22, 768  ;;  %p2126_p12 = scmp.lt.s32.totalorder %s2380_s22, %s2380_s22 }
  0x37   : > { %p2119_p5 = scmp.ne.s32.totalorder %s2380_s22, %s2118_s19  ;;  %p2127_p0 = scmp.lt.s32.totalorder %s2118_s19, %s2118_s19 }
  0x39   : > { %p2121_p7 = pnand %p2119_p5, %p2392_p13  ;;  %p2128_p1 = por %p2127_p0, %p2126_p12 }
  0x3b   : > { %p2122_p9 = pneg %p2121_p7 }
  0x3d   : > { %p2129_p2 = pnand %p2128_p1, %p2122_p9 }
  0x3f   : > { %2132 = shalt.err (!%p2129_p2)
}
  0x40   : > { %2019 = dma.hbm_to_vmem [thread:$0]  (!%p2376_p11), %s2678_s4, 768, %s2380_s22, [#allocation6], %s2270_s25, %s2270_s25, %s2271_s26  }
  0x41   : > { %s2133_s28 = scalar_lea.hbm %s2679_s5, 2688 }
  0x42   : > { %p2134_p6 = scmp.ne.s32.totalorder %s2679_s5, %s2133_s28  ;;  %p2140_p5 = scmp.lt.u32.totalorder %s2133_s28, %s2679_s5 }
  0x44   : > { %p2136_p10 = pnand %p2134_p6, %p2392_p13 }
  0x46   : > { %p2137_p3 = pneg %p2136_p10 }
  0x48   : > { %p2142_p7 = pnand %p2140_p5, %p2137_p3 }
  0x4a   : > { %2145 = shalt.err (!%p2142_p7)
}
  0x4b   : > { %s2146_s19 = scalar_lea.vmem %s297_s24, 2688  ;;  %p2154_p1 = scmp.lt.s32.totalorder %s297_s24, %s297_s24 }
  0x4c   : > { %p2147_p9 = scmp.ne.s32.totalorder %s297_s24, %s2146_s19  ;;  %p2155_p2 = scmp.lt.s32.totalorder %s2146_s19, %s2146_s19 }
  0x4e   : > { %p2149_p12 = pnand %p2147_p9, %p2392_p13  ;;  %p2156_p4 = por %p2155_p2, %p2154_p1 }
  0x50   : > { %p2150_p0 = pneg %p2149_p12 }
  0x52   : > { %p2157_p8 = pnand %p2156_p4, %p2150_p0 }
  0x54   : > { %2160 = shalt.err (!%p2157_p8)
}
  0x55   : > { %2022 = dma.hbm_to_vmem [thread:$0]  (!%p2376_p11), %s2679_s5, 2688, %s297_s24, [#allocation9], %s2270_s25, %s2270_s25, %s2271_s26  }
  0x56   : > { %s2465_s14 = sadd.s32 1, %s2265_s12   ;;  %s34_s30 = sadd.s32 1, %s2261_s11 }
  0x57   : > { %s31_s20 = ssub.s32 %s2265_s12, %s2465_s14  ;;  %p41_p8 = scmp.ne.s32.totalorder %s2261_s11, %s2257_s10 }
  0x58   : > { %p32_p4 = scmp.eq.s32.totalorder %s31_s20, 0  ;;  %p42_p13 = scmp.eq.s32.totalorder %s2265_s12, 0 }
  0x59   : > { %p2034_p6 = scmp.lt.s32.totalorder %s2265_s12, 2  ;;  %p2698_p3 = scmp.eq.s32.totalorder %s2346_s13, 1 }
  0x5a   : > { %s2475_s16 = scalar_select %p32_p4, %s2261_s11, %s34_s30  }
  0x5b   : > { %p43_p10 = por %p42_p13, %p41_p8  ;;  %p2479_p5 = por %p2698_p3, %p41_p8 }
  0x5c   : > { %s319_s28 = sand.u32 1, %s2261_s11   ;;  %s1673_s29 = sshll.u32 %s2265_s12, 8 }
  0x5d   : > { %s1627_s24 = sshll.u32 %s319_s28, 4  ;;  %s2488_s23 = scalar_lea.hbm %s2674_s0, %s1673_s29 }
  0x5e   : > { %s323_s19 = scalar_lea.vmem [#allocation2], %s1627_s24  ;;  %p2490_p11 = pnand %p2034_p6, %p43_p10 }
  0x5f   : > { %s330_s22 = sshll.u32 %s323_s19, 4  ;;  %s2496_s20 = scalar_lea.sflag [#allocation3], %s319_s28  ;;  %s2494_s22 = int_to_ptr.vmem [resolvable:$true] %s330_s22 }
  0x60   : > { %s2161_s30 = scalar_lea.hbm %s2488_s23, 256  ;;  %p2163_p9 = pneg %p2490_p11 }
  0x61   : > { %p2162_p7 = scmp.ne.s32.totalorder %s2488_s23, %s2161_s30  ;;  %s2166_s18 = scalar_lea.hbm %s2674_s0, 512 }
  0x62   : > { %p2167_p1 = scmp.lt.u32.totalorder %s2488_s23, %s2674_s0  ;;  %p2168_p2 = scmp.lt.u32.totalorder %s2166_s18, %s2161_s30 }
  0x63   : > { %p2164_p12 = pnand %p2163_p9, %p2162_p7  ;;  %p2170_p8 = scmp.lt.u32.totalorder %s2161_s30, %s2488_s23 }
  0x64   : > { %p2169_p4 = por %p2168_p2, %p2167_p1 }
  0x65   : > { %p2165_p0 = pneg %p2164_p12 }
  0x66   : > { %p2171_p13 = por %p2170_p8, %p2169_p4 }
  0x68   : > { %p2172_p6 = pnand %p2171_p13, %p2165_p0 }
  0x6a   : > { %2175 = shalt.err (!%p2172_p6)
}
  0x6b   : > { %s2176_s28 = scalar_lea.vmem %s2494_s22, 256  ;;  %s2272_s29 = smov [#allocation2]  }
  0x6c   : > { %p2177_p10 = scmp.ne.s32.totalorder %s2494_s22, %s2176_s28  ;;  %s2181_s24 = sshll.u32 %s2272_s29, 4  ;;  %s2182_s24 = int_to_ptr.vmem [resolvable:$false] %s2181_s24 }
  0x6d   : > { %s2183_s21 = scalar_lea.vmem %s2182_s24, 512  ;;  %p2184_p12 = scmp.lt.s32.totalorder %s2494_s22, %s2182_s24 }
  0x6e   : > { %p2179_p3 = pnand %p2177_p10, %p2163_p9  ;;  %p2185_p1 = scmp.lt.s32.totalorder %s2183_s21, %s2176_s28 }
  0x70   : > { %p2180_p7 = pneg %p2179_p3  ;;  %p2186_p2 = por %p2185_p1, %p2184_p12 }
  0x72   : > { %p2187_p4 = pnand %p2186_p2, %p2180_p7 }
  0x74   : > { %2190 = shalt.err (!%p2187_p4)
}
  0x75   : > { %2026 = dma.hbm_to_vmem [thread:$0]  (!%p2490_p11), %s2488_s23, 256, %s2494_s22, %s2496_s20, %s2270_s25, %s2270_s25, %s2271_s26  }
  0x76   : > { %p2701_p9 = scmp.ne.s32.totalorder %s2695_s17, 0 }
  0x77   : > { %s2530_s30 = sand.u32 (!%p2701_p9), 1, %s2257_s10   ;;  %p2702_p0 = scmp.ne.s32.totalorder (!%p2701_p9), %s2692_s15, 0 }
  0x78   : > { %342 = sbr.rel (%p2701_p9) target bundleno = 1457 (0x5b1), region = 56  ;;  %s1631_s18 = sshll.u32 (!%p2701_p9), %s2530_s30, 4 }
  0x79   : > { %s345_s19 = scalar_lea.sflag (!%p2701_p9), [#allocation3], %s2530_s30  ;;  %s348_s28 = scalar_lea.vmem (!%p2701_p9), [#allocation2], %s1631_s18 }
  0x7f   : > { %2236 = dma.done.wait (%p2702_p0), %s345_s19, 256  }
  0x80   : > { %2238 = vsyncadd (%p2702_p0), %s345_s19, 4294967040  ;;  %p2703_p8 = scmp.eq.s32.totalorder %s2346_s13, 0 }
  0x82   : > { %2240 = dma.done.wait (%p2703_p8), [#allocation6], 3072   ;;  %p2704_p11 = pmov %p2703_p8 }
  0x83   : > { %p2705_p13 = pmov %p2703_p8 }
  0x84   : > { %2242 = vsyncadd (%p2704_p11), [#allocation6], 4294964224 }
  0x85   : > { %2244 = dma.done.wait (%p2705_p13), [#allocation9], 2688   ;;  %p2706_p6 = pmov %p2703_p8 }
  0x86   : > { %vm398_vm0 = vcmask 130048   ;;  %v394_v0 = vld [vmem:[%s348_s28] sm:$0xff]  ;;  %v395_v1 = vld [vmem:[%s348_s28 + $0x8] sm:$0xff]  ;;  %vm577_vm1 = vcmask 392192   ;;  %vm927_vm2 = vcmask 113664   ;;  %vm934_vm3 = vcmask 1045504  }
  0x87   : > { %2246 = vsyncadd (%p2706_p6), [#allocation9], 4294964608  ;;  %v396_v2 = vld [vmem:[%s2675_s1] sm:$0xff]  ;;  %v1887_v3 = vpack.c.bf16 %v395_v1, %v394_v0  ;;  %v571_v4 = vld [vmem:[#allocation5 + $0x30] sm:$0xff]  ;;  %vm2273_vm4 = vmmov 1   ;;  %vm1112_vm6 = vcmask 457728  }
  0x88   : > { %1753 = vmatprep.mubr.msk.f32.mxu0 %vm398_vm0, %v396_v2  ;;  %v572_v5 = vld [vmem:[#allocation5 + $0x38] sm:$0xff]  ;;  %v397_v6 = vld [vmem:[%s2675_s1 + $0x8] sm:$0x3f]  ;;  %v1637_v7 = vld [vmem:[%s2675_s1 + $0x10] sm:$0xff]  ;;  %vm1471_vm7 = vcmask 781312   ;;  %vm1467_vm8 = vcmask 785408  }
  0x89   : > { %1888 = vmatprep.subr.bf16.mxu0 %v1887_v3  ;;  %v1895_v8 = vpack.c.bf16 %v572_v5, %v571_v4  ;;  %v573_v9 = vld [vmem:[#allocation5 + $0x40] sm:$0xff]  ;;  %v574_v10 = vld [vmem:[#allocation5 + $0x48] sm:$0xff]  ;;  %v1638_v11 = vld [vmem:[%s2675_s1 + $0x18] sm:$0x3f]  ;;  %vm1475_vm9 = vcmask 1043456   ;;  %s1670_s19 = sshll.u32 %s2346_s13, 4 }
  0x8a   : > { %1890 = vmatpush3.bf16.msra.mxu0 %v1887_v3  ;;  %v1899_v12 = vpack.c.bf16 %v574_v10, %v573_v9  ;;  %v575_v13 = vld [vmem:[#allocation5 + $0x50] sm:$0xff]  ;;  %v576_v14 = vld [vmem:[#allocation5 + $0x58] sm:$0xff]  ;;  %v480_v16 = vld [vmem:[#allocation5] sm:$0xff]  ;;  %s393_s28 = scalar_lea.vmem [#allocation10], %s2530_s30  ;;  %vm1511_vm12 = vcmask 8192   ;;  %s2709_s26 = sld [smem:[#allocation17_spill]] }
  0x8b   : > { %1892 = vmatprep.subr.bf16.mxu0 %v1887_v3  ;;  %v1903_v15 = vpack.c.bf16 %v576_v14, %v575_v13  ;;  %v481_v17 = vld [vmem:[#allocation5 + $0x8] sm:$0xff]  ;;  %v482_v21 = vld [vmem:[#allocation5 + $0x10] sm:$0xff]  ;;  %v483_v22 = vld [vmem:[#allocation5 + $0x18] sm:$0xff]  ;;  %s1526_s17 = sshll.u32 %s393_s28, 4  ;;  %s1514_s22 = scalar_lea.sflag [#allocation4], %s2530_s30  ;;  %s2632_s17 = int_to_ptr.vmem [resolvable:$true] %s1526_s17 }
  0x8c   : > { %v1907_v18 = vpack.c.bf16 %v481_v17, %v480_v16  ;;  %v1911_v25 = vpack.c.bf16 %v483_v22, %v482_v21  ;;  %v484_v26 = vld [vmem:[#allocation5 + $0x20] sm:$0xff]  ;;  %v485_v27 = vld [vmem:[#allocation5 + $0x28] sm:$0xff]  ;;  %v827_v33 = vld [vmem:[#allocation5 + $0x70] sm:$0xff]  ;;  %s2191_s9 = scalar_lea.vmem %s2632_s17, 16  ;;  %s2274_s13 = smov [#allocation10]  }
  0x8d   : > { %1754 = vmatmul.mubr.msk.f32.vlgmr.msra.gmra.mrb[0].mxu0 %vm398_vm0, %v397_v6  ;;  %v1915_v28 = vpack.c.bf16 %v485_v27, %v484_v26  ;;  %v825_v29 = vld [vmem:[#allocation5 + $0x60] sm:$0xff]  ;;  %v826_v30 = vld [vmem:[#allocation5 + $0x68] sm:$0xff]  ;;  %v828_v34 = vld [vmem:[#allocation5 + $0x78] sm:$0xff]  ;;  %p2192_p10 = scmp.ne.s32.totalorder %s2632_s17, %s2191_s9  ;;  %s2195_s20 = sshll.u32 %s2274_s13, 4  ;;  %s2196_s20 = int_to_ptr.vmem [resolvable:$false] %s2195_s20 }
  0x8e   : > { %1894 = vmatpush3.bf16.msra.mxu0 %v1887_v3  ;;  %1760 = vmatprep.mubr.msk.f32.mxu0 %vm398_vm0, %v1637_v7  ;;  %v1645_v31 = vld [vmem:[%s2675_s1 + $0x20] sm:$0xff]  ;;  %v1923_v32 = vpack.c.bf16 %v826_v30, %v825_v29  ;;  %v1646_v35 = vld [vmem:[%s2675_s1 + $0x28] sm:$0x3f]  ;;  %v1927_v36 = vpack.c.bf16 %v828_v34, %v827_v33  ;;  %v925_v42 = vld [vmem:[#allocation7] sm:$0xff]  ;;  %s2197_s29 = scalar_lea.vmem %s2196_s20, 32  ;;  %p2198_p12 = scmp.lt.s32.totalorder %s2632_s17, %s2196_s20 }
  0x8f   : > { %1896 = vmatprep.subr.bf16.mxu0 %v1895_v8  ;;  %v829_v37 = vld [vmem:[#allocation5 + $0x80] sm:$0xff]  ;;  %v830_v38 = vld [vmem:[#allocation5 + $0x88] sm:$0xff]  ;;  %1819 = vmatprep.mubr.msk.f32.mxu1 %vm927_vm2, %v925_v42  ;;  %v1276_v43 = vld [vmem:[#allocation7 + $0x20] sm:$0xff]  ;;  %p2193_p3 = pnand %p2192_p10, %p2479_p5  ;;  %p2199_p1 = scmp.lt.s32.totalorder %s2197_s29, %s2191_s9 }
  0x90   : > { %v1931_v39 = vpack.c.bf16 %v830_v38, %v829_v37  ;;  %v1651_v44 = vld [vmem:[%s2677_s3] ss:$0 sm:$0xff]  ;;  %vm2581_vm5 = vmpackc.low %vm934_vm3, %vm2273_vm4  ;;  %v1105_v53 = vld [vmem:[#allocation8 + $0x38] sm:$0xff]  ;;  %s2630_s23 = scalar_lea.hbm %s2709_s26, %s1670_s19 }
  0x91   : > { %1761 = vmatmul.mubr.msk.f32.vlgmr.msra.gmra.mrb[2].mxu0 %vm398_vm0, %v1638_v11  ;;  %v1106_v54 = vld [vmem:[#allocation8 + $0x40] sm:$0xff]  ;;  %v926_v55 = vld [vmem:[#allocation7 + $0x8] sm:$0xf]  ;;  %v1107_v59 = vld [vmem:[#allocation8 + $0x48] sm:$0xff]  ;;  %p2194_p7 = pneg %p2193_p3  ;;  %p2200_p2 = por %p2199_p1, %p2198_p12 }
  0x92   : > { %1898 = vmatpush3.bf16.msra.mxu0 %v1895_v8  ;;  %v1277_v56 = vld [vmem:[#allocation7 + $0x28] sm:$0xf]  ;;  %v1021_v57 = vld [vmem:[#allocation7 + $0x10] sm:$0xff]  ;;  %v1947_v58 = vpack.c.bf16 %v1106_v54, %v1105_v53  ;;  %v1108_v60 = vld [vmem:[#allocation8 + $0x50] sm:$0xff] }
  0x93   : > { %1900 = vmatprep.subr.bf16.mxu0 %v1899_v12  ;;  %v1022_v61 = vld [vmem:[#allocation7 + $0x18] sm:$0xf]  ;;  %v1951_v62 = vpack.c.bf16 %v1108_v60, %v1107_v59  ;;  %v1109_v63 = vld [vmem:[#allocation8 + $0x58] sm:$0xff]  ;;  %v1110_v0 = vld [vmem:[#allocation8 + $0x60] sm:$0xff]  ;;  %v1461_v60 = vlaneseq  ;;  %p2201_p4 = pnand %p2200_p2, %p2194_p7 }
  0x94   : > { %v1955_v1 = vpack.c.bf16 %v1110_v0, %v1109_v63  ;;  %v1111_v2 = vld [vmem:[#allocation8 + $0x68] sm:$0xff]  ;;  %v1015_v10 = vld [vmem:[#allocation8 + $0x10] sm:$0xff]  ;;  %v1016_v11 = vld [vmem:[#allocation8 + $0x18] sm:$0xff] }
  0x95   : > { %v1014_v4 = vld [vmem:[#allocation8 + $0x8] sm:$0xff]  ;;  %v1963_v14 = vpack.c.bf16 %v1016_v11, %v1015_v10  ;;  %v1362_v21 = vld [vmem:[#allocation8 + $0x80] sm:$0xff]  ;;  %v1365_v26 = vld [vmem:[#allocation8 + $0x98] sm:$0xff] }
  0x96   : > { %1902 = vmatpush3.bf16.msra.mxu0 %v1899_v12  ;;  %v1018_v16 = vld [vmem:[#allocation8 + $0x28] sm:$0xff]  ;;  %v1667_v29 = vld [vmem:[%s2680_s6] ss:$0 sm:$0xff]  ;;  %v1669_v38 = vld [vmem:[%s2681_s7 + $0x18] sm:$0xf] }
  0x97   : > { %1904 = vmatprep.subr.bf16.mxu0 %v1903_v15  ;;  %v1363_v22 = vld [vmem:[#allocation8 + $0x88] sm:$0xff] }
  0x98   : > { %v1464_v34 = vld [vmem:[%s2681_s7 + $0x8] sm:$0xf] }
  0x9a   : > { %1906 = vmatpush3.bf16.msra.mxu0 %v1903_v15  ;;  %v1017_v15 = vld [vmem:[#allocation8 + $0x20] sm:$0xff] }
  0x9b   : > { %1908 = vmatprep.subr.bf16.mxu0 %v1907_v18  ;;  %v1967_v17 = vpack.c.bf16 %v1018_v16, %v1017_v15 }
 0x160   : > { %v1755_v19 = vpop.f32.mrb[0].mxu0 }
 0x161   : > { %v471_v20 = vpop.f32.mrb[1].mxu0 }
 0x164   : > { %v1762_v23 = vpop.f32.mrb[2].mxu0 }
 0x165   : > { %v561_v24 = vpop.f32.mrb[3].mxu0 }
 0x166   : > { %1775 = vmatprep.mubr.msk.f32.mxu0 %vm577_vm1, %v561_v24  ;;  %v1981_v24 = vpack.c.bf16 %v1363_v22, %v1362_v21 }
 0x167   : > { %1776 = vmatmul.mubr.msk.f32.vlgmr.msra.gmra.mrb[4].mxu0 %vm577_vm1, %v1762_v23 }
 0x168   : > { %1910 = vmatpush3.bf16.msra.mxu0 %v1907_v18  ;;  %1790 = vmatprep.mubr.msk.f32.mxu0 %vm577_vm1, %v471_v20  ;;  %v1019_v18 = vld [vmem:[#allocation8 + $0x30] sm:$0xff]  ;;  %v1361_v20 = vld [vmem:[#allocation8 + $0x78] sm:$0xff] }
 0x169   : > { %1912 = vmatprep.subr.bf16.mxu0 %v1911_v25 }
 0x16c   : > { %1914 = vmatpush3.bf16.msra.mxu0 %v1911_v25  ;;  %v1364_v25 = vld [vmem:[#allocation8 + $0x90] sm:$0xff] }
 0x16d   : > { %1916 = vmatprep.subr.bf16.mxu0 %v1915_v28  ;;  %v1985_v27 = vpack.c.bf16 %v1365_v26, %v1364_v25 }
 0x170   : > { %1918 = vmatpush3.bf16.msra.mxu0 %v1915_v28  ;;  %v1366_v28 = vld [vmem:[#allocation8 + $0xa0] sm:$0xff] }
 0x171   : > { %1920 = vmatprep.subr.bf16.mxu0 %v1887_v3 }
 0x173   : > { %1791 = vmatmul.mubr.msk.f32.vlgmr.msra.gmra.mrb[4].mxu0 %vm577_vm1, %v1755_v19  ;;  %v1360_v19 = vld [vmem:[#allocation8 + $0x70] sm:$0xff] }
 0x174   : > { %1922 = vmatpush3.bf16.msra.mxu0 %v1887_v3  ;;  %1797 = vmatprep.mubr.msk.f32.mxu0 %vm398_vm0, %v1645_v31  ;;  %v1013_v3 = vld [vmem:[#allocation8] sm:$0xff]  ;;  %v1977_v23 = vpack.c.bf16 %v1361_v20, %v1360_v19 }
 0x175   : > { %1924 = vmatprep.subr.bf16.mxu0 %v1923_v32  ;;  %v1959_v5 = vpack.c.bf16 %v1014_v4, %v1013_v3 }
 0x177   : > { %1798 = vmatmul.mubr.msk.f32.vlgmr.msra.gmra.mrb[6].mxu0 %vm398_vm0, %v1646_v35 }
 0x178   : > { %1926 = vmatpush3.bf16.msra.mxu0 %v1923_v32 }
 0x179   : > { %1928 = vmatprep.subr.bf16.mxu0 %v1927_v36 }
 0x17c   : > { %1930 = vmatpush3.bf16.msra.mxu0 %v1927_v36  ;;  %v1463_v36 = vld [vmem:[%s2681_s7] sm:$0xff] }
 0x17d   : > { %1932 = vmatprep.subr.bf16.mxu0 %v1931_v39 }
 0x180   : > { %1934 = vmatpush3.bf16.msra.mxu0 %v1931_v39 }
 0x24a   : > { %v1799_v40 = vpop.f32.mrb[6].mxu0 }
 0x24b   : > { %v815_v41 = vpop.f32.mrb[7].mxu0 }
 0x24c   : > { %1812 = vmatprep.mubr.msk.f32.mxu0 %vm577_vm1, %v815_v41 }
 0x24d   : > { %1813 = vmatmul.mubr.msk.f32.vlgmr.msra.gmra.mrb[4].mxu0 %vm577_vm1, %v1799_v40  ;;  %v1668_v40 = vld [vmem:[%s2681_s7 + $0x10] sm:$0xff] }
 0x24e   : > { %1867 = vmatprep.mubr.msk.f32.mxu0 %vm927_vm2, %v1276_v43 }
 0x320   : > { %v1814_v45 = vpop.f32.mrb[4].mxu0 }
 0x321   : > { %v922_v46 = vadd.f32 %v1814_v45, %v1651_v44  ;;  %v903_v47 = vpop.f32.mrb[5].mxu0 }
 0x322   : > { %v921_v48 = vadd.f32 %v1651_v44, %v903_v47 }
 0x323   : > { %v924_v49 = vmax.f32 %v922_v46, 0.0 }
 0x324   : > { %v923_v50 = vmax.f32 %v921_v48, 0.0 }
 0x326   : > { %v1935_v52 = vpack.c.bf16 %v924_v49, %v923_v50 }
 0x328   : > { %1937 = vmatprep.subr.msk.bf16.mxu1 %vm2581_vm5, %v1935_v52  ;;  %1973 = vmatprep.subr.msk.bf16.mxu0 %vm2581_vm5, %v1935_v52 }
 0x329   : > { %1940 = vmatpush3.bf16.msk.msra.mxu1 %vm2581_vm5, %v1935_v52  ;;  %1976 = vmatpush3.bf16.msk.msra.mxu0 %vm2581_vm5, %v1935_v52 }
 0x32a   : > { %1943 = vmatprep.subr.msk.bf16.mxu1 %vm2581_vm5, %v1935_v52 }
 0x32c   : > { %1820 = vmatmul.mubr.msk.f32.vlgmr.msra.gmra.mrb[0].mxu1 %vm927_vm2, %v926_v55  ;;  %1868 = vmatmul.mubr.msk.f32.vlgmr.msra.gmra.mrb[8].mxu0 %vm927_vm2, %v1277_v56 }
 0x32d   : > { %1946 = vmatpush3.bf16.msk.msra.mxu1 %vm2581_vm5, %v1935_v52  ;;  %1826 = vmatprep.mubr.msk.f32.mxu1 %vm927_vm2, %v1021_v57 }
 0x32e   : > { %1948 = vmatprep.subr.bf16.mxu1 %v1947_v58 }
 0x330   : > { %1827 = vmatmul.mubr.msk.f32.vlgmr.msra.gmra.mrb[2].mxu1 %vm927_vm2, %v1022_v61 }
 0x331   : > { %1950 = vmatpush3.bf16.msra.mxu1 %v1947_v58 }
 0x332   : > { %1952 = vmatprep.subr.bf16.mxu1 %v1951_v62 }
 0x335   : > { %1954 = vmatpush3.bf16.msra.mxu1 %v1951_v62 }
 0x336   : > { %1956 = vmatprep.subr.bf16.mxu1 %v1955_v1 }
 0x339   : > { %1958 = vmatpush3.bf16.msra.mxu1 %v1955_v1  ;;  %v1462_v1 = vand.u32 127, %v1461_v60 }
 0x33a   : > { %1841 = vmatprep.subr.mxu1 %v1111_v2 }
 0x33b   : > { %vm1484_vm10 = vcmp.eq.s32.totalorder %v1462_v1, 0  ;;  %vm1506_vm11 = vcmp.eq.s32.totalorder %v1462_v1, 1 }
 0x33d   : > { %1842 = vmatpush3.msra.mxu1 %v1111_v2 }
 0x33e   : > { %1960 = vmatprep.subr.bf16.mxu1 %v1959_v5 }
 0x3ff   : > { %v1821_v6 = vpop.f32.mrb[0].mxu1  ;;  %v1869_v7 = vpop.f32.mrb[8].mxu0 }
 0x400   : > { %v1004_v8 = vpop.f32.mrb[1].mxu1  ;;  %v1350_v9 = vpop.f32.mrb[9].mxu0 }
 0x403   : > { %v1828_v12 = vpop.f32.mrb[2].mxu1 }
 0x404   : > { %v1095_v13 = vpop.f32.mrb[3].mxu1 }
 0x405   : > { %1843 = vmatprep.mubr.msk.f32.mxu1 %vm1112_vm6, %v1095_v13 }
 0x406   : > { %1844 = vmatmul.mubr.msk.f32.vlgmr.msra.gmra.mrb[4].mxu1 %vm1112_vm6, %v1828_v12 }
 0x407   : > { %1962 = vmatpush3.bf16.msra.mxu1 %v1959_v5  ;;  %1860 = vmatprep.mubr.msk.f32.mxu1 %vm1112_vm6, %v1004_v8 }
 0x408   : > { %1964 = vmatprep.subr.bf16.mxu1 %v1963_v14 }
 0x40b   : > { %1966 = vmatpush3.bf16.msra.mxu1 %v1963_v14 }
 0x40c   : > { %1968 = vmatprep.subr.bf16.mxu1 %v1967_v17 }
 0x40f   : > { %1970 = vmatpush3.bf16.msra.mxu1 %v1967_v17 }
 0x410   : > { %1858 = vmatprep.subr.mxu1 %v1019_v18 }
 0x413   : > { %1859 = vmatpush3.msra.mxu1 %v1019_v18 }
 0x414   : > { %1861 = vmatmul.mubr.msk.f32.vlgmr.msra.gmra.mrb[4].mxu1 %vm1112_vm6, %v1821_v6  ;;  %1978 = vmatprep.subr.bf16.mxu1 %v1977_v23 }
 0x415   : > { %1980 = vmatpush3.bf16.msra.mxu1 %v1977_v23  ;;  %1884 = vmatprep.mubr.msk.f32.mxu1 %vm1112_vm6, %v1350_v9 }
 0x416   : > { %1982 = vmatprep.subr.bf16.mxu1 %v1981_v24 }
 0x419   : > { %1984 = vmatpush3.bf16.msra.mxu1 %v1981_v24 }
 0x41a   : > { %1986 = vmatprep.subr.bf16.mxu1 %v1985_v27 }
 0x41d   : > { %1988 = vmatpush3.bf16.msra.mxu1 %v1985_v27 }
 0x41e   : > { %1882 = vmatprep.subr.mxu1 %v1366_v28 }
 0x421   : > { %1883 = vmatpush3.msra.mxu1 %v1366_v28 }
 0x422   : > { %1885 = vmatmul.mubr.msk.f32.vlgmr.msra.gmra.mrb[4].mxu1 %vm1112_vm6, %v1869_v7  ;;  %v1509_v7 = vld [vmem:[%s2682_s8] sm:$0x1] }
 0x4f5   : > { %v1886_v30 = vpop.f32.mrb[4].mxu1 }
 0x4f6   : > { %v1458_v31 = vadd.f32 %v1886_v30, %v1667_v29  ;;  %v1439_v32 = vpop.f32.mrb[5].mxu1 }
 0x4f7   : > { %v1457_v33 = vadd.f32 %v1667_v29, %v1439_v32 }
 0x4f8   : > { %v1460_v35 = vmax.f32 %v1458_v31, 0.0 }
 0x4f9   : > { %v1459_v37 = vmax.f32 %v1457_v33, 0.0 }
 0x4fa   : > { %v1466_v39 = vmul.f32 %v1464_v34, %v1460_v35  ;;  %v1491_v43 = vmul.f32 %v1669_v38, %v1460_v35 }
 0x4fb   : > { %v1465_v41 = vmul.f32 %v1463_v36, %v1459_v37  ;;  %v1490_v45 = vmul.f32 %v1668_v40, %v1459_v37 }
 0x4fc   : > { %v1472_v42 = vsel %vm1471_vm7, %v1466_v39, 0.0  ;;  %v1495_v46 = vsel %vm1471_vm7, %v1491_v43, 0.0 }
 0x4fd   : > { %1473 = vadd.xlane.f32.xlu0 %v1472_v42  ;;  %v1468_v44 = vsel %vm1467_vm8, %v1465_v41, 0.0  ;;  %v1492_v47 = vsel %vm1467_vm8, %v1490_v45, 0.0 }
 0x4fe   : > { %1469 = vadd.xlane.f32.xlu1 %v1468_v44 }
 0x501   : > { %1496 = vadd.xlane.f32.xlu0 %v1495_v46 }
 0x502   : > { %1493 = vadd.xlane.f32.xlu1 %v1492_v47 }
 0x58a   : > { %v1474_v48 = vpop.xlane.xlu0 %1473 }
 0x58b   : > { %v1476_v49 = vsel %vm1475_vm9, %v1474_v48, 0.0  ;;  %v1470_v50 = vpop.xlane.xlu1 %1469 }
 0x58c   : > { %v1477_v51 = vadd.f32 %v1476_v49, %v1470_v50 }
 0x58e   : > { %v1478_v52 = vrot.slane %v1477_v51, 4  ;;  %v1497_v53 = vpop.xlane.xlu0 %1496 }
 0x58f   : > { %v1498_v54 = vsel %vm1475_vm9, %v1497_v53, 0.0  ;;  %v1494_v55 = vpop.xlane.xlu1 %1493 }
 0x590   : > { %v1479_v56 = vadd.f32 %v1478_v52, %v1477_v51  ;;  %v1499_v57 = vadd.f32 %v1498_v54, %v1494_v55 }
 0x592   : > { %v1480_v58 = vrot.slane %v1479_v56, 2  ;;  %v1500_v59 = vrot.slane %v1499_v57, 4 }
 0x594   : > { %v1481_v61 = vadd.f32 %v1480_v58, %v1479_v56  ;;  %v1501_v62 = vadd.f32 %v1500_v59, %v1499_v57 }
 0x596   : > { %v1482_v63 = vrot.slane %v1481_v61, 1  ;;  %v1502_v0 = vrot.slane %v1501_v62, 2 }
 0x598   : > { %v1503_v2 = vadd.f32 %v1502_v0, %v1501_v62  ;;  %v1483_v3 = vadd.f32 %v1482_v63, %v1481_v61 }
 0x59a   : > { %v1504_v4 = vrot.slane %v1503_v2, 1  ;;  %v1485_v6 = vsel %vm1484_vm10, %v1483_v3, 0.0 }
 0x59c   : > { %v1505_v5 = vadd.f32 %v1504_v4, %v1503_v2 }
 0x59e   : > { %v1507_v8 = vsel %vm1506_vm11, %v1505_v5, 0.0 }
 0x59f   : > { %v1508_v9 = vadd.f32 %v1507_v8, %v1485_v6 }
 0x5a1   : > { %v1510_v10 = vadd.f32 %v1509_v7, %v1508_v9 }
 0x5a3   : > { %1512 = vst.msk [vmem:[%s393_s28] sm:$0x1] %vm1511_vm12, %v1510_v10 }
 0x5a4   : > { %2204 = shalt.err (!%p2201_p4)
}
 0x5a5   : > { %s2205_s30 = scalar_lea.hbm %s2630_s23, 16  ;;  %s2209_s18 = scalar_lea.hbm %s2709_s26, 32 }
 0x5a6   : > { %p2206_p9 = scmp.ne.s32.totalorder %s2630_s23, %s2205_s30  ;;  %p2210_p11 = scmp.lt.u32.totalorder %s2630_s23, %s2709_s26 }
 0x5a7   : > { %p2211_p13 = scmp.lt.u32.totalorder %s2209_s18, %s2205_s30  ;;  %p2213_p10 = scmp.lt.u32.totalorder %s2205_s30, %s2630_s23 }
 0x5a8   : > { %p2207_p0 = pnand %p2206_p9, %p2479_p5 }
 0x5a9   : > { %p2212_p6 = por %p2211_p13, %p2210_p11 }
 0x5aa   : > { %p2208_p8 = pneg %p2207_p0 }
 0x5ab   : > { %p2214_p3 = por %p2213_p10, %p2212_p6 }
 0x5ad   : > { %p2215_p7 = pnand %p2214_p3, %p2208_p8 }
 0x5af   : > { %2218 = shalt.err (!%p2215_p7)
}
 0x5b0   : > { %2011 = dma.vmem_to_hbm [thread:$0]  (%p2479_p5), %s2632_s17, 16, %s2630_s23, %s1514_s22  }
 0x5b1 PF: > { %s2710_s25 = sld [smem:[#allocation15_spill]]  ;;  %s2711_s15 = sld [smem:[#allocation16_spill]] }
 0x5b2   : > { %p2713_p1 = scmp.ge.s32.totalorder %s2265_s12, 2 }
 0x5b7   : > { %s1538_s9 = sand.u32 1, %s2710_s25   ;;  %p2712_p12 = scmp.ne.s32.totalorder %s2711_s15, 0 }
 0x5b8   : > { %s1539_s13 = scalar_lea.sflag [#allocation4], %s1538_s9 }
 0x5b9   : > { %p2028_p2 = pnand %p2713_p1, %p2712_p12 }
 0x5bb   : > { %2248 = dma.done.wait (!%p2028_p2), %s1539_s13, 16  }
 0x5bc   : > { %2250 = vsyncadd (!%p2028_p2), %s1539_s13, 4294967280  ;;  %p24_p4 = scmp.ge.s32.totalorder %s2465_s14, 4   ;;  %s2714_s30 = smov %s2257_s10 }
 0x5bd   : > { %s2715_s10 = smov %s2261_s11  ;;  %s2716_s11 = smov %s2475_s16 }
 0x5be   : > { %s2717_s12 = smov %s2465_s14  ;;  %26 = sbr.rel (!%p24_p4) target bundleno = 9 (0x9), region = 122 }
 0x5c5   :  { %1543 = vsyncpa [#allocation3], 1 }
 0x5c6   :  { %1545 = vsyncpa [#allocation3 + $0x1], 1 }
 0x5c7   :  { %1546 = vsyncpa [#allocation6], 1 }
 0x5c8   :  { %1547 = vsyncpa [#allocation9], 1 }
 0x5c9   :  { %1548 = vsyncpa [#allocation4], 1 }
 0x5ca   :  { %1550 = vsyncpa [#allocation4 + $0x1], 1 }

</bundles_post_ra>
